<compile_context>
chip_gen: v7x
topology: tpu7x:2x2x1
jax: 0.10.0
libtpu: 0.0.40
codegen_flags: <defaults>
</compile_context>

<pallas_src>
import functools
import numpy as np
import jax
import jax.numpy as jnp
from jax.experimental import pallas as pl
from jax.experimental.pallas import tpu as pltpu


# ----------------------------------------------------------------------------- helpers
def _cdiv(a, b):
    return -(-a // b)


def _round_up(x, m):
    return ((x + m - 1) // m) * m


def _pad2(a, rows, cols, dtype=jnp.float32):
    a = jnp.asarray(a, jnp.float32)
    out = jnp.zeros((rows, cols), jnp.float32).at[: a.shape[0], : a.shape[1]].set(a)
    return out.astype(dtype)


def _pad_row(a, cols, dtype=jnp.float32):
    a = jnp.asarray(a, jnp.float32).reshape(1, -1)
    out = jnp.zeros((1, cols), jnp.float32).at[:, : a.shape[1]].set(a)
    return out.astype(dtype)


def _pad_gru(w, b, f, fp, w_dtype):
    """w: (f, 3f) math layout, gate blocks [r|z|n]; b: (3f,).  Pad each gate block."""
    w = jnp.asarray(w, jnp.float32)
    b = jnp.asarray(b, jnp.float32)
    w_blocks = [_pad2(w[:, g * f:(g + 1) * f], fp, fp, w_dtype) for g in range(3)]
    b_blocks = [_pad_row(b[g * f:(g + 1) * f], fp) for g in range(3)]
    return jnp.concatenate(w_blocks, axis=1), jnp.concatenate(b_blocks, axis=1)


def _vmem_capacity_bytes(default=64 * 1024 * 1024):
    """Physical VMEM per core; conservative 64 MiB (v7x) fallback."""
    try:
        info = pltpu.get_tpu_info()
        for name in ("vmem_capacity_bytes", "vmem_size_bytes", "vmem_bytes"):
            v = getattr(info, name, None)
            if v:
                return int(v)
    except Exception:
        pass
    return default


# ----------------------------------------------------------------------------- kernel 1
def _node_kernel(x_ref, wn_ref, bn_ref, wa_ref, ba_ref,
                 h_ref, t_ref, src_ref, *, leaky_alpha, fout_pad):
    """Per-atom dense transforms, row-tiled over atoms.

    One fused MXU pass computes [atom_fc1 | atom_fc2(atom half)]; a second
    computes `attend(H)`.
    """
    pre = jnp.dot(x_ref[...], wn_ref[...],
                  preferred_element_type=jnp.float32) + bn_ref[...]
    pre1 = pre[:, :fout_pad]
    h = jnp.where(pre1 > 0, pre1, leaky_alpha * pre1)      # leaky_relu(atom_fc1(x))
    h_ref[...] = h
    src_ref[...] = pre[:, fout_pad:]                       # atom half of atom_fc2 (+bias)
    # TODO(synk): training-mode nn.Dropout before `attend` / before `W` is treated
    # as eval-mode identity.
    t = jnp.dot(h.astype(jnp.bfloat16), wa_ref[...],
                preferred_element_type=jnp.float32) + ba_ref[...]
    t_ref[...] = t.astype(t_ref.dtype)


# ----------------------------------------------------------------------------- kernel 2
def _edge_kernel(wb_ref, src_ref, t_ref, h_ref, bond_ref, adj_ref, w2b_ref,
                 wwh_ref, wwn_ref, wih_ref, bih_ref, whh_ref, bhh_ref,
                 out_ref, m_sc, l_sc, acc_sc,
                 *, leaky_alpha, elu_alpha, fout_pad):
    """Flash-style edge attention over src tiles + ELU aggregation + GRUCell.

    Grid: (dst tiles [parallel], src tiles [arbitrary]).  Running max / denom /
    accumulator live in VMEM scratch; the output is written on the last src step.
    """
    k = pl.program_id(1)

    @pl.when(k == 0)
    def _():
        m_sc[...] = jnp.full_like(m_sc, -jnp.inf)
        l_sc[...] = jnp.zeros_like(l_sc)
        acc_sc[...] = jnp.zeros_like(acc_sc)

    tm, tk, fbp = bond_ref.shape

    # Per-edge neighbour transform: leaky_relu(atom_fc2([x_src, bond_{src->dst}])).
    bond2 = bond_ref[...].reshape(tm * tk, fbp)                       # bf16
    bw = jnp.dot(bond2, w2b_ref[...],
                 preferred_element_type=jnp.float32).reshape(tm, tk, fout_pad)
    pre2 = src_ref[...][None, :, :] + bw                              # (tm, tk, F) f32
    nf = jnp.where(pre2 > 0, pre2, leaky_alpha * pre2)

    # Attention logits: leaky_relu(W([H_dst, nf])); softmax math stays in f32.
    h = h_ref[...]                                                    # (tm, F) f32
    hdot = jnp.sum(h * wwh_ref[...], axis=-1, keepdims=True) + wb_ref[0, 0]   # (tm, 1)
    ndot = jnp.sum(nf * wwn_ref[...][None, :, :], axis=-1)                    # (tm, tk)
    logits = hdot + ndot
    logits = jnp.where(logits > 0, logits, leaky_alpha * logits)
    masked = jnp.where(adj_ref[...] > 0.0, logits, -1e30)

    # Online (flash-style) softmax over the src axis.
    m_prev = m_sc[...]
    m_new = jnp.maximum(m_prev, jnp.max(masked, axis=-1, keepdims=True))
    alpha = jnp.exp(m_prev - m_new)
    p = jnp.exp(masked - m_new)                                       # (tm, tk) f32
    l_sc[...] = alpha * l_sc[...] + jnp.sum(p, axis=-1, keepdims=True)
    acc_sc[...] = alpha * acc_sc[...] + jnp.dot(
        p.astype(jnp.bfloat16), t_ref[...], preferred_element_type=jnp.float32)
    m_sc[...] = m_new

    @pl.when(k == pl.num_programs(1) - 1)
    def _():
        transform = acc_sc[...] * pl.reciprocal(l_sc[...], approx=True)
        context = jnp.where(transform > 0, transform,
                            elu_alpha * (jnp.exp(jnp.minimum(transform, 0.0)) - 1.0))
        # GRUCell(input=context, hidden=h), PyTorch gate order [r|z|n].
        gi = jnp.dot(context.astype(jnp.bfloat16), wih_ref[...],
                     preferred_element_type=jnp.float32) + bih_ref[...]
        gh = jnp.dot(h.astype(jnp.bfloat16), whh_ref[...],
                     preferred_element_type=jnp.float32) + bhh_ref[...]
        f = fout_pad
        r = jax.nn.sigmoid(gi[:, :f] + gh[:, :f])
        z = jax.nn.sigmoid(gi[:, f:2 * f] + gh[:, f:2 * f])
        n = jnp.tanh(gi[:, 2 * f:] + r * gh[:, 2 * f:])
        out_ref[...] = ((1.0 - z) * n + z * h).astype(out_ref.dtype)


# ----------------------------------------------------------------------------- wrapper
def gat_layer_v1_forward(atom_features, bond_dense, adj, params, *,
                         leaky_alpha, elu_alpha, row_tile=256, src_tile=512):
    """GATlayerV1 forward (eval mode).

    atom_features : (N, in_features)           f32
    bond_dense    : (N, N, bond_features_dim)  f32, indexed [src, dst, :]
    adj           : (N, N)                     0/1, indexed [src, dst]
    Returns (final_output_embedding, new_atom_features), each (N, out_features).
    Every atom must have at least one in-neighbour (the original module is
    inconsistent otherwise).
    """
    x = jnp.asarray(atom_features, jnp.float32)
    bond_dense = jnp.asarray(bond_dense, jnp.float32)
    adj = jnp.asarray(adj, jnp.float32)

    n_atoms, fin = x.shape
    fb = bond_dense.shape[-1]
    fout = params["w1"].shape[1]

    fin_p = _round_up(fin, 128)
    fb_p = _round_up(fb, 128)
    fout_p = _round_up(fout, 128)

    # ---- generation-aware VMEM budgets (v7x: 64 MiB/TC, v5e/v6e: 128 MiB).
    vmem_cap = _vmem_capacity_bytes()
    vmem_limit = min(int(vmem_cap) * 3 // 4, 100 * 1024 * 1024)
    tile_budget = min(vmem_cap // 2, 40 * 1024 * 1024)

    # dst (row) tile: multiple of 16 (bf16 sublane packing of the adjacency block)
    tm_max = max(16, min(_round_up(row_tile, 16), _round_up(n_atoms, 16)))
    # src tile: multiple of 128 (lane dim of the adjacency block)
    tk_max = max(128, min(_round_up(src_tile, 128), _round_up(n_atoms, 128)))

    def _tile_bytes(tm_, tk_):
        e = tm_ * tk_
        by = 2 * e * fb_p * 2                          # bond tile bf16, double-buffered
        by += 2 * e * 2                                # adjacency tile bf16
        by += 2 * e * fout_p * 4                       # f32 bw/nf intermediates
        by += 2 * (tk_ + 2 * tm_) * fout_p * 4         # src/t/h/out/acc blocks (approx)
        by += 2 * (fb_p + 8 * fout_p) * fout_p * 2     # resident weights (approx)
        return by

    tm, tk = tm_max, tk_max
    while tk > 128 and _tile_bytes(tm, tk) > tile_budget:      # shrink src tile first
        tk = max(128, _round_up(tk // 2, 128))
    while tm > 16 and _tile_bytes(tm, tk) > tile_budget:       # keep the dst tile large
        tm = max(16, _round_up(tm // 2, 16))

    # Reduce padding waste: split N as evenly as the chosen tile counts allow.
    n_dst_tiles = _cdiv(n_atoms, tm)
    tm = _round_up(_cdiv(n_atoms, n_dst_tiles), 16)
    npad_dst = n_dst_tiles * tm
    n_src_tiles = _cdiv(n_atoms, tk)
    tk = _round_up(_cdiv(n_atoms, n_src_tiles), 128)
    npad_src = n_src_tiles * tk

    tn1 = 128                                          # kernel-1 row tile
    npad_big = _round_up(max(npad_dst, npad_src), tn1)

    # Zero padding is exact: padded src rows are masked by adj, padded dst rows /
    # padded feature columns are sliced off at the end.
    x_p = (jnp.zeros((npad_big, fin_p), jnp.float32)
           .at[:n_atoms, :fin].set(x).astype(jnp.bfloat16))
    bond_t = (jnp.zeros((npad_dst, npad_src, fb_p), jnp.float32)
              .at[:n_atoms, :n_atoms, :fb].set(jnp.transpose(bond_dense, (1, 0, 2)))
              .astype(jnp.bfloat16))                   # -> [dst, src, :]
    adj_t = (jnp.zeros((npad_dst, npad_src), jnp.float32)
             .at[:n_atoms, :n_atoms].set(adj.T).astype(jnp.bfloat16))

    w1 = jnp.asarray(params["w1"], jnp.float32)
    w2 = jnp.asarray(params["w2"], jnp.float32)
    wn = jnp.concatenate([_pad2(w1, fin_p, fout_p),
                          _pad2(w2[:fin], fin_p, fout_p)], axis=1).astype(jnp.bfloat16)
    bn = jnp.concatenate([_pad_row(params["b1"], fout_p),
                          _pad_row(params["b2"], fout_p)], axis=1)
    wa = _pad2(params["wa"], fout_p, fout_p, jnp.bfloat16)
    ba = _pad_row(params["ba"], fout_p)
    w2b = _pad2(w2[fin:], fb_p, fout_p, jnp.bfloat16)          # bond half of atom_fc2
    ww = jnp.asarray(params["ww"], jnp.float32).reshape(-1)
    wwh = _pad_row(ww[:fout], fout_p)                          # W, dst-feature half
    wwn = _pad_row(ww[fout:], fout_p)                          # W, neighbour half
    wb = jnp.asarray(params["wb"], jnp.float32).reshape(1, 1)  # W bias -> SMEM scalar
    wih, bih = _pad_gru(params["w_ih"], params["b_ih"], fout, fout_p, jnp.bfloat16)
    whh, bhh = _pad_gru(params["w_hh"], params["b_hh"], fout, fout_p, jnp.bfloat16)

    const1 = lambda i: (0, 0)
    rowm1 = lambda i: (i, 0)
    const2 = lambda i, k: (0, 0)

    # ---- kernel 1: per-atom transforms
    h_p, t_p, src_p = pl.pallas_call(
        functools.partial(_node_kernel, leaky_alpha=float(leaky_alpha), fout_pad=fout_p),
        out_shape=(jax.ShapeDtypeStruct((npad_big, fout_p), jnp.float32),   # H
                   jax.ShapeDtypeStruct((npad_big, fout_p), jnp.bfloat16),  # attend(H)
                   jax.ShapeDtypeStruct((npad_big, fout_p), jnp.float32)),  # fc2 atom half
        grid=(npad_big // tn1,),
        in_specs=[
            pl.BlockSpec((tn1, fin_p), rowm1),           # x tile
            pl.BlockSpec((fin_p, 2 * fout_p), const1),   # [atom_fc1 W | atom_fc2 W atom]
            pl.BlockSpec((1, 2 * fout_p), const1),       # [b1 | b2]
            pl.BlockSpec((fout_p, fout_p), const1),      # attend W
            pl.BlockSpec((1, fout_p), const1),           # attend b
        ],
        out_specs=[pl.BlockSpec((tn1, fout_p), rowm1)] * 3,
        compiler_params=pltpu.CompilerParams(
            dimension_semantics=("parallel",), vmem_limit_bytes=vmem_limit),
    )(x_p, wn, bn, wa, ba)

    # ---- kernel 2: flash-style edge attention + ELU aggregation + GRUCell
    out_p = pl.pallas_call(
        functools.partial(_edge_kernel, leaky_alpha=float(leaky_alpha),
                          elu_alpha=float(elu_alpha), fout_pad=fout_p),
        out_shape=jax.ShapeDtypeStruct((npad_dst, fout_p), jnp.float32),
        grid=(npad_dst // tm, npad_src // tk),
        in_specs=[
            pl.BlockSpec(memory_space=pltpu.MemorySpace.SMEM),     # W bias scalar
            pl.BlockSpec((tk, fout_p), lambda i, k: (k, 0)),       # fc2 atom half, src tile
            pl.BlockSpec((tk, fout_p), lambda i, k: (k, 0)),       # attend(H), src tile
            pl.BlockSpec((tm, fout_p), lambda i, k: (i, 0)),       # H, dst tile
            pl.BlockSpec((tm, tk, fb_p), lambda i, k: (i, k, 0)),  # bonds [dst, src, :]
            pl.BlockSpec((tm, tk), lambda i, k: (i, k)),           # adjacency [dst, src]
            pl.BlockSpec((fb_p, fout_p), const2),                  # atom_fc2 W (bond part)
            pl.BlockSpec((1, fout_p), const2),                     # W weight, dst half
            pl.BlockSpec((1, fout_p), const2),                     # W weight, nbr half
            pl.BlockSpec((fout_p, 3 * fout_p), const2),            # GRU w_ih
            pl.BlockSpec((1, 3 * fout_p), const2),                 # GRU b_ih
            pl.BlockSpec((fout_p, 3 * fout_p), const2),            # GRU w_hh
            pl.BlockSpec((1, 3 * fout_p), const2),                 # GRU b_hh
        ],
        out_specs=pl.BlockSpec((tm, fout_p), lambda i, k: (i, 0)),
        scratch_shapes=[pltpu.VMEM((tm, 1), jnp.float32),          # running max
                        pltpu.VMEM((tm, 1), jnp.float32),          # running denom
                        pltpu.VMEM((tm, fout_p), jnp.float32)],    # accumulator
        compiler_params=pltpu.CompilerParams(
            dimension_semantics=("parallel", "arbitrary"),
            vmem_limit_bytes=vmem_limit),
    )(wb, src_p, t_p, h_p, bond_t, adj_t, w2b, wwh, wwn, wih, bih, whh, bhh)

    return out_p[:n_atoms, :fout], h_p[:n_atoms, :fout]


# ----------------------------------------------------------------------------- pure-JAX reference
def _reference(x, bond_dense, adj, params, *, leaky_alpha, elu_alpha):
    lrelu = lambda v: jnp.where(v > 0, v, leaky_alpha * v)
    n, fin = x.shape
    fout = params["w1"].shape[1]
    h = lrelu(x @ params["w1"] + params["b1"])
    t = h @ params["wa"] + params["ba"]
    w2 = params["w2"]
    src_part = x @ w2[:fin] + params["b2"]
    bond_part = jnp.einsum("sdf,fo->dso", bond_dense, w2[fin:])
    nf = lrelu(src_part[None, :, :] + bond_part)
    ww = params["ww"].reshape(-1)
    logits = lrelu((h @ ww[:fout])[:, None]
                   + jnp.einsum("dsf,f->ds", nf, ww[fout:]) + params["wb"])
    masked = jnp.where(adj.T > 0.5, logits, -1e30)
    m = jnp.max(masked, axis=-1, keepdims=True)
    e = jnp.exp(masked - m)
    score = e / jnp.sum(e, axis=-1, keepdims=True)
    transform = score @ t
    context = jnp.where(transform > 0, transform,
                        elu_alpha * (jnp.exp(jnp.minimum(transform, 0.0)) - 1.0))
    gi = context @ params["w_ih"] + params["b_ih"]
    gh = h @ params["w_hh"] + params["b_hh"]
    r = jax.nn.sigmoid(gi[:, :fout] + gh[:, :fout])
    z = jax.nn.sigmoid(gi[:, fout:2 * fout] + gh[:, fout:2 * fout])
    nn_ = jnp.tanh(gi[:, 2 * fout:] + r * gh[:, 2 * fout:])
    return (1.0 - z) * nn_ + z * h, h


# ----------------------------------------------------------------------------- demo
if __name__ == "__main__":
    # N > 128 so the online-softmax path runs over >1 src tile (tk = 128).
    N, FIN, FB, FOUT = 144, 16, 8, 32
    LEAKY, ELU_A = 0.2, 1.0

    ks = jax.random.split(jax.random.PRNGKey(0), 16)

    def lin(k, fan_in, shape):
        bound = 1.0 / np.sqrt(fan_in)
        return jax.random.uniform(k, shape, jnp.float32, -bound, bound)

    params = {
        "w1": lin(ks[0], FIN, (FIN, FOUT)),           "b1": lin(ks[1], FIN, (FOUT,)),
        "w2": lin(ks[2], FIN + FB, (FIN + FB, FOUT)), "b2": lin(ks[3], FIN + FB, (FOUT,)),
        "wa": lin(ks[4], FOUT, (FOUT, FOUT)),         "ba": lin(ks[5], FOUT, (FOUT,)),
        "ww": lin(ks[6], 2 * FOUT, (2 * FOUT,)),      "wb": lin(ks[7], 2 * FOUT, ()),
        "w_ih": lin(ks[8], FOUT, (FOUT, 3 * FOUT)),   "b_ih": lin(ks[9], FOUT, (3 * FOUT,)),
        "w_hh": lin(ks[10], FOUT, (FOUT, 3 * FOUT)),  "b_hh": lin(ks[11], FOUT, (3 * FOUT,)),
    }

    x = jax.random.normal(ks[12], (N, FIN), jnp.float32)

    # Ring graph: edges i -> i+1 and i+1 -> i, so every atom has >= 1 in-neighbour.
    idx = np.arange(N)
    adj_np = np.zeros((N, N), np.float32)
    adj_np[idx, (idx + 1) % N] = 1.0
    adj_np[(idx + 1) % N, idx] = 1.0
    adj = jnp.asarray(adj_np)
    bond_dense = jax.random.normal(ks[13], (N, N, FB), jnp.float32) * adj[:, :, None]

    # Small tiles force a (3 dst-tiles x 2 src-tiles) grid to exercise the
    # online softmax across multiple src steps.
    out, new_atom = gat_layer_v1_forward(x, bond_dense, adj, params,
                                         leaky_alpha=LEAKY, elu_alpha=ELU_A,
                                         row_tile=64, src_tile=128)
    jax.block_until_ready((out, new_atom))

    ref_out, ref_h = _reference(x, bond_dense, adj, params,
                                leaky_alpha=LEAKY, elu_alpha=ELU_A)
    # bf16 matmul inputs (f32 accumulation) vs f32 reference -> loose tolerance.
    np.testing.assert_allclose(np.asarray(new_atom), np.asarray(ref_h), rtol=3e-2, atol=3e-2)
    np.testing.assert_allclose(np.asarray(out), np.asarray(ref_out), rtol=3e-2, atol=3e-2)
    assert out.shape == (N, FOUT) and new_atom.shape == (N, FOUT)
    print("KERNEL_OK")
</pallas_src>

<mosaic_0001>
module attributes {stable_mosaic.version = 11 : i64} {
  func.func @_node_kernel(%arg0: i32, %arg1: memref<128x128xbf16, #tpu.memory_space<vmem>>, %arg2: memref<128x256xbf16, #tpu.memory_space<vmem>>, %arg3: memref<1x256xf32, #tpu.memory_space<vmem>>, %arg4: memref<128x128xbf16, #tpu.memory_space<vmem>>, %arg5: memref<1x128xf32, #tpu.memory_space<vmem>>, %arg6: memref<128x128xf32, #tpu.memory_space<vmem>>, %arg7: memref<128x128xbf16, #tpu.memory_space<vmem>>, %arg8: memref<128x128xf32, #tpu.memory_space<vmem>>) attributes {dimension_semantics = [#tpu.dimension_semantics<parallel>], iteration_bounds = array<i64: 2>, scalar_prefetch = 0 : i64, scratch_operands = 0 : i64, tpu.core_type = #tpu.core_type<tc>, window_params = [{transform_indices = @transform_0, window_bounds = array<i64: 128, 128>}, {pipeline_mode = #tpu.pipeline_mode<synchronous>, transform_indices = @transform_1, window_bounds = array<i64: 128, 256>}, {pipeline_mode = #tpu.pipeline_mode<synchronous>, transform_indices = @transform_2, window_bounds = array<i64: 1, 256>}, {pipeline_mode = #tpu.pipeline_mode<synchronous>, transform_indices = @transform_3, window_bounds = array<i64: 128, 128>}, {pipeline_mode = #tpu.pipeline_mode<synchronous>, transform_indices = @transform_4, window_bounds = array<i64: 1, 128>}, {transform_indices = @transform_5, window_bounds = array<i64: 128, 128>}, {transform_indices = @transform_6, window_bounds = array<i64: 128, 128>}, {transform_indices = @transform_7, window_bounds = array<i64: 128, 128>}]} {
    %c0 = arith.constant 0 : index
    %c0_0 = arith.constant 0 : index
    %0 = vector.load %arg1[%c0, %c0_0] : memref<128x128xbf16, #tpu.memory_space<vmem>>, vector<128x128xbf16>
    %c0_1 = arith.constant 0 : index
    %c0_2 = arith.constant 0 : index
    %1 = vector.load %arg2[%c0_1, %c0_2] : memref<128x256xbf16, #tpu.memory_space<vmem>>, vector<128x256xbf16>
    %cst = arith.constant dense<0.000000e+00> : vector<128x256xf32>
    %2 = tpu.matmul %0, %1, %cst {dimension_numbers = #tpu.dot_dimension_numbers<[1], [0], [0], [1], [0, 0, 1, 1], [], []>} : vector<128x128xbf16>, vector<128x256xbf16>, vector<128x256xf32> -> vector<128x256xf32>
    %c0_3 = arith.constant 0 : index
    %c0_4 = arith.constant 0 : index
    %3 = vector.load %arg3[%c0_3, %c0_4] : memref<1x256xf32, #tpu.memory_space<vmem>>, vector<1x256xf32>
    %4 = vector.broadcast %3 : vector<1x256xf32> to vector<128x256xf32>
    %5 = arith.addf %2, %4 : vector<128x256xf32>
    %6 = vector.extract_strided_slice %5 {offsets = [0, 0], sizes = [128, 128], strides = [1, 1]} : vector<128x256xf32> to vector<128x128xf32>
    %cst_5 = arith.constant 0.000000e+00 : f32
    %7 = vector.broadcast %cst_5 : f32 to vector<128x128xf32>
    %8 = arith.cmpf ogt, %6, %7 : vector<128x128xf32>
    %cst_6 = arith.constant 2.000000e-01 : f32
    %9 = vector.broadcast %cst_6 : f32 to vector<128x128xf32>
    %10 = arith.mulf %9, %6 : vector<128x128xf32>
    %11 = arith.select %8, %6, %10 : vector<128x128xi1>, vector<128x128xf32>
    %c0_7 = arith.constant 0 : index
    %c0_8 = arith.constant 0 : index
    %12 = vector.load %arg6[%c0_7, %c0_8] : memref<128x128xf32, #tpu.memory_space<vmem>>, vector<128x128xf32>
    tpu.vector_store %arg6[%c0_7, %c0_8], %11 {strides = array<i32>} : memref<128x128xf32, #tpu.memory_space<vmem>>, vector<128x128xf32>,
    %13 = vector.extract_strided_slice %5 {offsets = [0, 128], sizes = [128, 128], strides = [1, 1]} : vector<128x256xf32> to vector<128x128xf32>
    %c0_9 = arith.constant 0 : index
    %c0_10 = arith.constant 0 : index
    %14 = vector.load %arg8[%c0_9, %c0_10] : memref<128x128xf32, #tpu.memory_space<vmem>>, vector<128x128xf32>
    tpu.vector_store %arg8[%c0_9, %c0_10], %13 {strides = array<i32>} : memref<128x128xf32, #tpu.memory_space<vmem>>, vector<128x128xf32>,
    %15 = arith.truncf %11 : vector<128x128xf32> to vector<128x128xbf16>
    %c0_11 = arith.constant 0 : index
    %c0_12 = arith.constant 0 : index
    %16 = vector.load %arg4[%c0_11, %c0_12] : memref<128x128xbf16, #tpu.memory_space<vmem>>, vector<128x128xbf16>
    %cst_13 = arith.constant dense<0.000000e+00> : vector<128x128xf32>
    %17 = tpu.matmul %15, %16, %cst_13 {dimension_numbers = #tpu.dot_dimension_numbers<[1], [0], [0], [1], [0, 0, 1, 1], [], []>} : vector<128x128xbf16>, vector<128x128xbf16>, vector<128x128xf32> -> vector<128x128xf32>
    %c0_14 = arith.constant 0 : index
    %c0_15 = arith.constant 0 : index
    %18 = vector.load %arg5[%c0_14, %c0_15] : memref<1x128xf32, #tpu.memory_space<vmem>>, vector<1x128xf32>
    %19 = vector.broadcast %18 : vector<1x128xf32> to vector<128x128xf32>
    %20 = arith.addf %17, %19 : vector<128x128xf32>
    %21 = arith.truncf %20 : vector<128x128xf32> to vector<128x128xbf16>
    %c0_16 = arith.constant 0 : index
    %c0_17 = arith.constant 0 : index
    %22 = vector.load %arg7[%c0_16, %c0_17] : memref<128x128xbf16, #tpu.memory_space<vmem>>, vector<128x128xbf16>
    tpu.vector_store %arg7[%c0_16, %c0_17], %21 {strides = array<i32>} : memref<128x128xbf16, #tpu.memory_space<vmem>>, vector<128x128xbf16>,
    return
  }
  func.func @transform_0(%arg0: i32) -> (i32, i32) {
    %c0_i32 = arith.constant 0 : i32
    %c0_i32_0 = arith.constant 0 : i32
    return %arg0, %c0_i32 : i32, i32
  }
  func.func @transform_1(%arg0: i32) -> (i32, i32) {
    %c0_i32 = arith.constant 0 : i32
    %c0_i32_0 = arith.constant 0 : i32
    %c0_i32_1 = arith.constant 0 : i32
    return %c0_i32, %c0_i32_0 : i32, i32
  }
  func.func @transform_2(%arg0: i32) -> (i32, i32) {
    %c0_i32 = arith.constant 0 : i32
    %c0_i32_0 = arith.constant 0 : i32
    %c0_i32_1 = arith.constant 0 : i32
    return %c0_i32, %c0_i32_0 : i32, i32
  }
  func.func @transform_3(%arg0: i32) -> (i32, i32) {
    %c0_i32 = arith.constant 0 : i32
    %c0_i32_0 = arith.constant 0 : i32
    %c0_i32_1 = arith.constant 0 : i32
    return %c0_i32, %c0_i32_0 : i32, i32
  }
  func.func @transform_4(%arg0: i32) -> (i32, i32) {
    %c0_i32 = arith.constant 0 : i32
    %c0_i32_0 = arith.constant 0 : i32
    %c0_i32_1 = arith.constant 0 : i32
    return %c0_i32, %c0_i32_0 : i32, i32
  }
  func.func @transform_5(%arg0: i32) -> (i32, i32) {
    %c0_i32 = arith.constant 0 : i32
    %c0_i32_0 = arith.constant 0 : i32
    return %arg0, %c0_i32 : i32, i32
  }
  func.func @transform_6(%arg0: i32) -> (i32, i32) {
    %c0_i32 = arith.constant 0 : i32
    %c0_i32_0 = arith.constant 0 : i32
    return %arg0, %c0_i32 : i32, i32
  }
  func.func @transform_7(%arg0: i32) -> (i32, i32) {
    %c0_i32 = arith.constant 0 : i32
    %c0_i32_0 = arith.constant 0 : i32
    return %arg0, %c0_i32 : i32, i32
  }
}

</mosaic_0001>

<bundles_post_ra>
// kernel: tpu_custom_call.1
= control target key start
LH: loop header
LB: loop body
LE: loop exit
PB: predicated region body
PF: predicated region fallthrough
CT: control target
= control target key end

     0   :  { %13 = vsyncpa [#allocation3], 0  ;;  %s2198_s0 = inlined_call_operand.hbm [shape: bf16[256,128], index: 0, kind: input, shape index: {}]   ;;  %s2199_s1 = inlined_call_operand.hbm [shape: bf16[128,256], index: 1, kind: input, shape index: {}]   ;;  %s2200_s2 = inlined_call_operand.vmem [shape: f32[1,256], index: 2, kind: input, shape index: {}]   ;;  %s2201_s3 = inlined_call_operand.hbm [shape: bf16[128,128], index: 3, kind: input, shape index: {}]   ;;  %s2202_s4 = inlined_call_operand.vmem [shape: f32[1,128], index: 4, kind: input, shape index: {}]   ;;  %s2203_s5 = inlined_call_operand.hbm [shape: f32[256,128], index: 5, kind: output, shape index: {0}]   ;;  %s2204_s6 = inlined_call_operand.hbm [shape: bf16[256,128], index: 6, kind: output, shape index: {1}]   ;;  %s2205_s7 = inlined_call_operand.hbm [shape: f32[256,128], index: 7, kind: output, shape index: {2}]  }
   0x1   :  { %15 = vsyncpa [#allocation3 + $0x1], 0 }
   0x2   :  { %16 = vsyncpa [#allocation6], 0 }
   0x3   :  { %17 = vsyncpa [#allocation4], 0 }
   0x4   :  { %19 = vsyncpa [#allocation4 + $0x1], 0 }
   0x5   :  { %20 = vsyncpa [#allocation10], 0 }
   0x6   :  { %22 = vsyncpa [#allocation10 + $0x1], 0  ;;  %s1768_s24 = smov 0   ;;  %s1770_s25 = smov 0  }
   0x7   :  { %s1772_s26 = smov 0   ;;  %s1774_s27 = smov 0  }
   0x8 LB: > { %s1789_s28 = sadd.s32 4294967295, %s1711_s27   ;;  %s2207_s29 = sadd.s32 4294967294, %s1711_s27   ;;  %s1711_s27 = sphi %s1774_s27, %s2235_s27   ;;  %s1707_s26 = sphi %s1772_s26, %s2234_s26   ;;  %s1703_s25 = sphi %s1770_s25, %s2233_s25   ;;  %s1699_s24 = sphi %s1768_s24, %s2232_s24  }
   0x9   : > { %p48_p0 = scmp.ne.s32.totalorder %s1703_s25, %s1699_s24  ;;  %p2206_p1 = scmp.eq.s32.totalorder %s1789_s28, 0 }
   0xa   : > { %p162_p3 = scmp.eq.s32.totalorder %s2207_s29, 1  ;;  %p1180_p5 = scmp.ge.s32.totalorder %s1711_s27, 1 }
   0xb   : > { %p1800_p4 = por %p2206_p1, %p48_p0  ;;  %p221_p7 = scmp.lt.s32.totalorder %s1711_s27, 3 }
   0xc   : > { %p1805_p6 = por %p162_p3, %p48_p0  ;;  %s1713_s10 = smov [#allocation5]  }
   0xd   : > { %s2214_s30 = scalar_select %p1800_p4, 1, 0 }
   0xe   : > { %s2215_s8 = scalar_select %p1805_p6, 1, 0 }
   0xf   : > { %p1810_p8 = pnand %p1180_p5, %p221_p7  ;;  %s233_s11 = sshll.u32 %s1713_s10, 4  ;;  %s1814_s11 = int_to_ptr.vmem [resolvable:$true] %s233_s11 }
  0x10   : > { %s1714_s13 = smov [#allocation7]   ;;  %s1495_s17 = scalar_lea.hbm %s2199_s1, 2048 }
  0x11   : > { %p1385_p9 = pneg %p1810_p8  ;;  %s249_s14 = sshll.u32 %s1714_s13, 4  ;;  %s1825_s14 = int_to_ptr.vmem [resolvable:$true] %s249_s14 }
  0x12   : > { %p1496_p12 = scmp.ne.s32.totalorder %s2199_s1, %s1495_s17  ;;  %p1502_p5 = scmp.lt.u32.totalorder %s1495_s17, %s2199_s1 }
  0x13   : > { %p1821_p11 = pnand %p1385_p9, %p2206_p1 }
  0x15   : > { %p1497_p13 = pneg %p1821_p11 }
  0x17   : > { %p1498_p0 = pnand %p1497_p13, %p1496_p12 }
  0x19   : > { %p1499_p3 = pneg %p1498_p0 }
  0x1b   : > { %p1504_p7 = pnand %p1502_p5, %p1499_p3 }
  0x1d   : > { %1507 = shalt.err (!%p1504_p7)
}
  0x1e   : > { %s1508_s22 = scalar_lea.vmem %s1814_s11, 2048  ;;  %p1516_p2 = scmp.lt.s32.totalorder %s1814_s11, %s1814_s11 }
  0x1f   : > { %p1509_p9 = scmp.ne.s32.totalorder %s1814_s11, %s1508_s22  ;;  %p1517_p12 = scmp.lt.s32.totalorder %s1508_s22, %s1508_s22 }
  0x21   : > { %p1511_p10 = pnand %p1509_p9, %p1497_p13  ;;  %p1518_p0 = por %p1517_p12, %p1516_p2 }
  0x23   : > { %p1512_p1 = pneg %p1511_p10 }
  0x25   : > { %p1519_p6 = pnand %p1518_p0, %p1512_p1 }
  0x27   : > { %1522 = shalt.err (!%p1519_p6)
}
  0x28   : > { %s1715_s23 = smov 128   ;;  %s1716_s10 = smov 8  }
  0x29   : > { %1388 = dma.hbm_to_vmem [thread:$0]  (!%p1821_p11), %s2199_s1, 2048, %s1814_s11, [#allocation6], %s1715_s23, %s1715_s23, %s1716_s10  }
  0x2a   : > { %s1523_s18 = scalar_lea.hbm %s2201_s3, 1024 }
  0x2b   : > { %p1524_p2 = scmp.ne.s32.totalorder %s2201_s3, %s1523_s18  ;;  %p1530_p10 = scmp.lt.u32.totalorder %s1523_s18, %s2201_s3 }
  0x2d   : > { %p1526_p1 = pnand %p1524_p2, %p1497_p13 }
  0x2f   : > { %p1527_p6 = pneg %p1526_p1 }
  0x31   : > { %p1532_p3 = pnand %p1530_p10, %p1527_p6 }
  0x33   : > { %1535 = shalt.err (!%p1532_p3)
}
  0x34   : > { %s1536_s11 = scalar_lea.vmem %s1825_s14, 1024  ;;  %p1544_p12 = scmp.lt.s32.totalorder %s1825_s14, %s1825_s14 }
  0x35   : > { %p1537_p5 = scmp.ne.s32.totalorder %s1825_s14, %s1536_s11  ;;  %p1545_p0 = scmp.lt.s32.totalorder %s1536_s11, %s1536_s11 }
  0x37   : > { %p1539_p7 = pnand %p1537_p5, %p1497_p13  ;;  %p1546_p2 = por %p1545_p0, %p1544_p12 }
  0x39   : > { %p1540_p9 = pneg %p1539_p7 }
  0x3b   : > { %p1547_p1 = pnand %p1546_p2, %p1540_p9 }
  0x3d   : > { %1550 = shalt.err (!%p1547_p1)
}
  0x3e   : > { %s2208_s23 = smov 64   ;;  %s1718_s10 = smov 4  }
  0x3f   : > { %1391 = dma.hbm_to_vmem [thread:$0]  (!%p1821_p11), %s2201_s3, 1024, %s1825_s14, [#allocation6], %s2208_s23, %s2208_s23, %s1718_s10  }
  0x40   : > { %s1883_s16 = sadd.s32 1, %s1711_s27   ;;  %s35_s18 = sadd.s32 1, %s1707_s26 }
  0x41   : > { %s32_s17 = ssub.s32 %s1711_s27, %s1883_s16  ;;  %p42_p6 = scmp.ne.s32.totalorder %s1707_s26, %s1703_s25 }
  0x42   : > { %p33_p13 = scmp.eq.s32.totalorder %s32_s17, 0  ;;  %p43_p10 = scmp.eq.s32.totalorder %s1711_s27, 0 }
  0x43   : > { %p2218_p5 = scmp.eq.s32.totalorder %s1789_s28, 1  ;;  %p1408_p9 = scmp.lt.s32.totalorder %s1711_s27, 2 }
  0x44   : > { %s1892_s19 = scalar_select %p33_p13, %s1707_s26, %s35_s18  }
  0x45   : > { %p44_p3 = por %p43_p10, %p42_p6  ;;  %p1896_p7 = por %p2218_p5, %p42_p6 }
  0x46   : > { %s266_s20 = sand.u32 1, %s1707_s26   ;;  %s1254_s14 = sshll.u32 %s1711_s27, 10 }
  0x47   : > { %s2219_s12 = scalar_select %p1896_p7, 1, 0 }
  0x48   : > { %s1184_s21 = sshll.u32 %s266_s20, 6  ;;  %s1906_s13 = scalar_lea.hbm %s2198_s0, %s1254_s14 }
  0x49   : > { %s270_s15 = scalar_lea.vmem [#allocation2], %s1184_s21  ;;  %p1910_p11 = pnand %p1408_p9, %p44_p3 }
  0x4a   : > { %s277_s17 = sshll.u32 %s270_s15, 4  ;;  %s1914_s29 = scalar_lea.sflag [#allocation3], %s266_s20  ;;  %s1908_s17 = int_to_ptr.vmem [resolvable:$true] %s277_s17 }
  0x4b   : > { %s1551_s23 = scalar_lea.hbm %s1906_s13, 1024  ;;  %p1553_p0 = pneg %p1910_p11 }
  0x4c   : > { %p1552_p12 = scmp.ne.s32.totalorder %s1906_s13, %s1551_s23  ;;  %s1556_s22 = scalar_lea.hbm %s2198_s0, 2048 }
  0x4d   : > { %p1557_p13 = scmp.lt.u32.totalorder %s1906_s13, %s2198_s0  ;;  %p1558_p6 = scmp.lt.u32.totalorder %s1556_s22, %s1551_s23 }
  0x4e   : > { %p1554_p2 = pnand %p1553_p0, %p1552_p12  ;;  %p1560_p3 = scmp.lt.u32.totalorder %s1551_s23, %s1906_s13 }
  0x4f   : > { %p1559_p10 = por %p1558_p6, %p1557_p13 }
  0x50   : > { %p1555_p1 = pneg %p1554_p2 }
  0x51   : > { %p1561_p5 = por %p1560_p3, %p1559_p10 }
  0x53   : > { %p1562_p9 = pnand %p1561_p5, %p1555_p1 }
  0x55   : > { %1565 = shalt.err (!%p1562_p9)
}
  0x56   : > { %s1566_s20 = scalar_lea.vmem %s1908_s17, 1024  ;;  %s1719_s21 = smov [#allocation2]  }
  0x57   : > { %p1567_p12 = scmp.ne.s32.totalorder %s1908_s17, %s1566_s20  ;;  %s1571_s14 = sshll.u32 %s1719_s21, 4  ;;  %s1572_s14 = int_to_ptr.vmem [resolvable:$false] %s1571_s14 }
  0x58   : > { %s1573_s11 = scalar_lea.vmem %s1572_s14, 2048  ;;  %p1574_p4 = scmp.lt.s32.totalorder %s1908_s17, %s1572_s14 }
  0x59   : > { %p1569_p2 = pnand %p1567_p12, %p1553_p0  ;;  %p1575_p13 = scmp.lt.s32.totalorder %s1573_s11, %s1566_s20 }
  0x5b   : > { %p1570_p7 = pneg %p1569_p2  ;;  %p1576_p6 = por %p1575_p13, %p1574_p4 }
  0x5d   : > { %p1577_p10 = pnand %p1576_p6, %p1570_p7 }
  0x5f   : > { %1580 = shalt.err (!%p1577_p10)
}
  0x60   : > { %s2221_s23 = smov 64   ;;  %289 = sbr.rel (%p1810_p8) target bundleno = 674 (0x2a2), region = 40 }
  0x61   : > { %1395 = dma.hbm_to_vmem [thread:$0]  (!%p1910_p11), %s1906_s13, 1024, %s1908_s17, %s1914_s29, %s2221_s23, %s2221_s23, %s1718_s10  }
  0x62   : > { %s1948_s22 = sand.u32 (!%p1810_p8), 1, %s1703_s25   ;;  %p2222_p4 = scmp.ne.s32.totalorder (!%p1810_p8), %s2214_s30, 0 }
  0x63   : > { %s1188_s15 = sshll.u32 (!%p1810_p8), %s1948_s22, 6  ;;  %s292_s20 = scalar_lea.sflag (!%p1810_p8), [#allocation3], %s1948_s22 }
  0x64   : > { %s1954_s18 = scalar_lea.vmem (!%p1810_p8), [#allocation2], %s1188_s15 }
  0x67   : > { %1682 = dma.done.wait (%p2222_p4), %s292_s20, 1024  }
  0x68   : > { %1684 = vsyncadd (%p2222_p4), %s292_s20, 4294966272  ;;  %p2223_p7 = scmp.eq.s32.totalorder %s1789_s28, 0 }
  0x6a   : > { %1686 = dma.done.wait (%p2223_p7), [#allocation6], 3072   ;;  %p2224_p8 = pmov %p2223_p7 }
  0x6b   : > { %v1720_v0 = vmov 0   ;;  %v1455_v1 = vld [vmem:[#allocation5 + $0x4] ss:$8 sps:$4 sm:$0xff]   ;;  %v1457_v2 = vld [vmem:[#allocation5] ss:$8 sps:$4 sm:$0xff]   ;;  %v1489_v18 = vld [vmem:[#allocation7 + $0x10] sm:$0xff]   ;;  %v383_v33 = vlaneseq }
  0x6c   : > { %1688 = vsyncadd (%p2224_p8), [#allocation6], 4294964224  ;;  %553 = vmatprep.mubr.bf16.mxu0 %v1720_v0  ;;  %521 = vmatprep.subr.bf16.mxu0 %v1455_v1  ;;  %v1458_v3 = vld [vmem:[#allocation5 + $0x14] ss:$8 sps:$4 sm:$0xff]   ;;  %v1460_v4 = vld [vmem:[#allocation5 + $0x10] ss:$8 sps:$4 sm:$0xff]  }
  0x6d   : > { %522 = vmatpush1.bf16.msra.mxu0 %v1457_v2  ;;  %v1461_v5 = vld [vmem:[#allocation5 + $0x24] ss:$8 sps:$4 sm:$0xff]   ;;  %v1463_v6 = vld [vmem:[#allocation5 + $0x20] ss:$8 sps:$4 sm:$0xff]   ;;  %v1464_v7 = vld [vmem:[#allocation5 + $0x34] ss:$8 sps:$4 sm:$0xff]  }
  0x6e   : > { %523 = vmatprep.subr.bf16.mxu0 %v1458_v3  ;;  %v1466_v8 = vld [vmem:[#allocation5 + $0x30] ss:$8 sps:$4 sm:$0xff]   ;;  %v1467_v9 = vld [vmem:[#allocation5 + $0x44] ss:$8 sps:$4 sm:$0xff]   ;;  %v1469_v10 = vld [vmem:[#allocation5 + $0x40] ss:$8 sps:$4 sm:$0xff]  }
  0x6f   : > { %v1470_v11 = vld [vmem:[#allocation5 + $0x54] ss:$8 sps:$4 sm:$0xff]   ;;  %v1472_v12 = vld [vmem:[#allocation5 + $0x50] ss:$8 sps:$4 sm:$0xff]   ;;  %v1473_v13 = vld [vmem:[#allocation5 + $0x64] ss:$8 sps:$4 sm:$0xff]  }
  0x70   : > { %v1487_v14 = vld [vmem:[#allocation7] sm:$0xff]   ;;  %v1488_v15 = vld [vmem:[#allocation7 + $0x8] sm:$0xff]   ;;  %v1476_v17 = vld [vmem:[#allocation5 + $0x74] ss:$8 sps:$4 sm:$0xff]   ;;  %v384_v34 = vshrl.u32 %v383_v33, 7  ;;  %s1191_s9 = sshll.u32 %s1948_s22, 7 }
  0x71   : > { %524 = vmatpush1.bf16.msra.mxu0 %v1460_v4  ;;  %v1475_v16 = vld [vmem:[#allocation5 + $0x60] ss:$8 sps:$4 sm:$0xff]   ;;  %1337 = vmatprep.subr.bf16.mxu1 %v1487_v14  ;;  %v1478_v19 = vld [vmem:[#allocation5 + $0x70] ss:$8 sps:$4 sm:$0xff]   ;;  %s1991_s10 = scalar_lea.vmem [#allocation11], %s1191_s9  ;;  %s1996_s13 = scalar_lea.vmem [#allocation8], %s1191_s9 }
  0x72   : > { %525 = vmatprep.subr.bf16.mxu0 %v1461_v5  ;;  %1338 = vmatpush3.bf16.msra.mxu1 %v1487_v14  ;;  %v1490_v20 = vld [vmem:[#allocation7 + $0x18] sm:$0xff]   ;;  %v1479_v21 = vld [vmem:[%s1954_s18] sm:$0xff]   ;;  %v1480_v22 = vld [vmem:[%s1954_s18 + $0x8] sm:$0xff]   ;;  %v385_v35 = vsub.s32 0, %v384_v34  ;;  %v389_v37 = vsub.s32 1, %v384_v34  ;;  %s2211_s17 = sshll.u32 %s1789_s28, 11 }
  0x73   : > { %1339 = vmatprep.subr.bf16.mxu1 %v1488_v15  ;;  %v1481_v23 = vld [vmem:[%s1954_s18 + $0x10] sm:$0xff]   ;;  %v1482_v24 = vld [vmem:[%s1954_s18 + $0x18] sm:$0xff]   ;;  %v1483_v25 = vld [vmem:[%s1954_s18 + $0x20] sm:$0xff]   ;;  %s2062_s11 = scalar_lea.hbm %s2203_s5, %s2211_s17  ;;  %s994_s23 = sshll.u32 %s1996_s13, 4  ;;  %s2065_s23 = int_to_ptr.vmem [resolvable:$true] %s994_s23 }
  0x74   : > { %v1484_v26 = vld [vmem:[%s1954_s18 + $0x28] sm:$0xff]   ;;  %v1485_v27 = vld [vmem:[%s1954_s18 + $0x30] sm:$0xff]   ;;  %v1486_v28 = vld [vmem:[%s1954_s18 + $0x38] sm:$0xff]   ;;  %s971_s20 = scalar_lea.sflag [#allocation4], %s1948_s22  ;;  %s1581_s18 = scalar_lea.vmem %s2065_s23, 2048 }
  0x75   : > { %526 = vmatpush1.bf16.msra.mxu0 %v1463_v6  ;;  %v1491_v29 = vld [vmem:[#allocation7 + $0x20] sm:$0xff]   ;;  %v1492_v30 = vld [vmem:[#allocation7 + $0x28] sm:$0xff]   ;;  %v1493_v31 = vld [vmem:[#allocation7 + $0x30] sm:$0xff]   ;;  %p1582_p11 = scmp.ne.s32.totalorder %s2065_s23, %s1581_s18  ;;  %p2225_p0 = scmp.ne.s32.totalorder %s2219_s12, 0 }
  0x76   : > { %527 = vmatprep.subr.bf16.mxu0 %v1464_v7  ;;  %1340 = vmatpush3.bf16.msra.mxu1 %v1488_v15  ;;  %v1494_v32 = vld [vmem:[#allocation7 + $0x38] sm:$0xff]   ;;  %v381_v36 = vld [vmem:[%s2200_s2] sm:$0x3]  ;;  %s1721_s29 = smov [#allocation8]  }
  0x77   : > { %1341 = vmatprep.subr.bf16.mxu1 %v1489_v18  ;;  %v1983_v38 = vrot.slane %v381_v36, %v385_v35  ;;  %v1986_v39 = vrot.slane %v381_v36, %v389_v37  ;;  %p1583_p1 = pnand %p1582_p11, %p2225_p0  ;;  %s1585_s30 = sshll.u32 %s1721_s29, 4  ;;  %s1586_s30 = int_to_ptr.vmem [resolvable:$false] %s1585_s30 }
  0x78   : > { %s1587_s9 = scalar_lea.vmem %s1586_s30, 4096  ;;  %p1588_p5 = scmp.lt.s32.totalorder %s2065_s23, %s1586_s30 }
  0x79   : > { %528 = vmatpush1.bf16.msra.mxu0 %v1466_v8  ;;  %p1584_p3 = pneg %p1583_p1  ;;  %p1589_p9 = scmp.lt.s32.totalorder %s1587_s9, %s1581_s18 }
  0x7a   : > { %529 = vmatprep.subr.bf16.mxu0 %v1467_v9  ;;  %1342 = vmatpush3.bf16.msra.mxu1 %v1489_v18 }
  0x7b   : > { %1343 = vmatprep.subr.bf16.mxu1 %v1490_v20  ;;  %p1590_p12 = por %p1589_p9, %p1588_p5 }
  0x7d   : > { %530 = vmatpush1.bf16.msra.mxu0 %v1469_v10  ;;  %p1591_p2 = pnand %p1590_p12, %p1584_p3 }
  0x7e   : > { %531 = vmatprep.subr.bf16.mxu0 %v1470_v11  ;;  %1344 = vmatpush3.bf16.msra.mxu1 %v1490_v20 }
  0x7f   : > { %1345 = vmatprep.subr.bf16.mxu1 %v1491_v29 }
  0x81   : > { %532 = vmatpush1.bf16.msra.mxu0 %v1472_v12 }
  0x82   : > { %533 = vmatprep.subr.bf16.mxu0 %v1473_v13  ;;  %1346 = vmatpush3.bf16.msra.mxu1 %v1491_v29 }
  0x83   : > { %1347 = vmatprep.subr.bf16.mxu1 %v1492_v30 }
  0x85   : > { %534 = vmatpush1.bf16.msra.mxu0 %v1475_v16 }
  0x86   : > { %535 = vmatprep.subr.bf16.mxu0 %v1476_v17  ;;  %1348 = vmatpush3.bf16.msra.mxu1 %v1492_v30 }
  0x87   : > { %1349 = vmatprep.subr.bf16.mxu1 %v1493_v31 }
  0x89   : > { %536 = vmatpush1.bf16.msra.mxu0 %v1478_v19 }
  0x8a   : > { %1350 = vmatpush3.bf16.msra.mxu1 %v1493_v31 }
  0x8b   : > { %1351 = vmatprep.subr.bf16.mxu1 %v1494_v32 }
  0x8c   : > { %554 = vmatmul.mubr.bf16.vlgmr.msra.gmra.mrb[0].mxu0 %v1479_v21 }
  0x8d   : > { %563 = vmatprep.mubr.bf16.mxu0 %v1720_v0 }
  0x8e   : > { %1352 = vmatpush3.bf16.msra.mxu1 %v1494_v32 }
  0x94   : > { %564 = vmatmul.mubr.bf16.gmra.mrb[4].mxu0 %v1480_v22 }
  0x95   : > { %573 = vmatprep.mubr.bf16.mxu0 %v1720_v0 }
  0x9c   : > { %574 = vmatmul.mubr.bf16.gmra.mrb[8].mxu0 %v1481_v23 }
  0x9d   : > { %583 = vmatprep.mubr.bf16.mxu0 %v1720_v0 }
  0xa4   : > { %584 = vmatmul.mubr.bf16.gmra.mrb[12].mxu0 %v1482_v24 }
  0xa5   : > { %593 = vmatprep.mubr.bf16.mxu0 %v1720_v0 }
  0xac   : > { %594 = vmatmul.mubr.bf16.gmra.mrb[16].mxu0 %v1483_v25 }
  0xad   : > { %603 = vmatprep.mubr.bf16.mxu0 %v1720_v0 }
  0xb4   : > { %604 = vmatmul.mubr.bf16.gmra.mrb[20].mxu0 %v1484_v26 }
  0xb5   : > { %613 = vmatprep.mubr.bf16.mxu0 %v1720_v0 }
  0xbc   : > { %614 = vmatmul.mubr.bf16.gmra.mrb[24].mxu0 %v1485_v27 }
  0xbd   : > { %623 = vmatprep.mubr.bf16.mxu0 %v1720_v0 }
  0xc4   : > { %624 = vmatmul.mubr.bf16.gmra.mrb[28].mxu0 %v1486_v28 }
 0x15f   : > { %v555_v40 = vpop.f32.mrb[0].mxu0 }
 0x160   : > { %v556_v41 = vadd.f32 %v555_v40, %v1983_v38  ;;  %v557_v42 = vpop.f32.mrb[1].mxu0 }
 0x161   : > { %v558_v43 = vadd.f32 %v557_v42, %v1986_v39  ;;  %v559_v44 = vpop.f32.mrb[2].mxu0 }
 0x162   : > { %v650_v45 = vmul.f32 0.2, %v556_v41  ;;  %v560_v46 = vadd.f32 %v559_v44, %v1983_v38  ;;  %v561_v47 = vpop.f32.mrb[3].mxu0  ;;  %vm634_vm0 = vcmp.gt.f32.partialorder %v556_v41, 0.0 }
 0x163   : > { %698 = vst [vmem:[%s1991_s10] sm:$0xff] %v558_v43  ;;  %v562_v48 = vadd.f32 %v561_v47, %v1986_v39 }
 0x164   : > { %v651_v49 = vmul.f32 0.2, %v560_v46  ;;  %vm635_vm1 = vcmp.gt.f32.partialorder %v560_v46, 0.0  ;;  %v666_v50 = vsel %vm634_vm0, %v556_v41, %v650_v45 }
 0x165   : > { %699 = vst [vmem:[%s1991_s10 + $0x8] sm:$0xff] %v562_v48  ;;  %682 = vst [vmem:[%s1996_s13] sm:$0xff] %v666_v50 }
 0x166   : > { %v667_v51 = vsel %vm635_vm1, %v560_v46, %v651_v49 }
 0x167   : > { %v565_v52 = vpop.f32.mrb[4].mxu0  ;;  %683 = vst [vmem:[%s1996_s13 + $0x8] sm:$0xff] %v667_v51  ;;  %v714_v53 = vpack.c.bf16 %v667_v51, %v666_v50 }
 0x168   : > { %v566_v54 = vadd.f32 %v565_v52, %v1983_v38  ;;  %v567_v55 = vpop.f32.mrb[5].mxu0 }
 0x169   : > { %v568_v56 = vadd.f32 %v567_v55, %v1986_v39  ;;  %v569_v57 = vpop.f32.mrb[6].mxu0  ;;  %1353 = vmatprep.mubr.bf16.mxu1 %v714_v53 }
 0x16a   : > { %vm636_vm2 = vcmp.gt.f32.partialorder %v566_v54, 0.0  ;;  %v652_v58 = vmul.f32 0.2, %v566_v54  ;;  %v570_v59 = vadd.f32 %v569_v57, %v1983_v38  ;;  %v571_v60 = vpop.f32.mrb[7].mxu0 }
 0x16b   : > { %700 = vst [vmem:[%s1991_s10 + $0x10] sm:$0xff] %v568_v56  ;;  %v572_v61 = vadd.f32 %v571_v60, %v1986_v39 }
 0x16c   : > { %vm637_vm3 = vcmp.gt.f32.partialorder %v570_v59, 0.0  ;;  %v653_v62 = vmul.f32 0.2, %v570_v59  ;;  %v668_v63 = vsel %vm636_vm2, %v566_v54, %v652_v58 }
 0x16d   : > { %701 = vst [vmem:[%s1991_s10 + $0x18] sm:$0xff] %v572_v61  ;;  %684 = vst [vmem:[%s1996_s13 + $0x10] sm:$0xff] %v668_v63 }
 0x16e   : > { %v669_v0 = vsel %vm637_vm3, %v570_v59, %v653_v62 }
 0x16f   : > { %v575_v1 = vpop.f32.mrb[8].mxu0  ;;  %685 = vst [vmem:[%s1996_s13 + $0x18] sm:$0xff] %v669_v0  ;;  %v715_v2 = vpack.c.bf16 %v669_v0, %v668_v63 }
 0x170   : > { %v576_v3 = vadd.f32 %v575_v1, %v1983_v38  ;;  %v577_v4 = vpop.f32.mrb[9].mxu0 }
 0x171   : > { %v578_v5 = vadd.f32 %v577_v4, %v1986_v39  ;;  %v579_v6 = vpop.f32.mrb[10].mxu0  ;;  %1354 = vmatmul.mubr.bf16.vlgmr.msra.gmra.mrb[0].mxu1 %v715_v2 }
 0x172   : > { %vm638_vm4 = vcmp.gt.f32.partialorder %v576_v3, 0.0  ;;  %v654_v7 = vmul.f32 0.2, %v576_v3  ;;  %v580_v8 = vadd.f32 %v579_v6, %v1983_v38  ;;  %v581_v9 = vpop.f32.mrb[11].mxu0 }
 0x173   : > { %702 = vst [vmem:[%s1991_s10 + $0x20] sm:$0xff] %v578_v5  ;;  %v582_v10 = vadd.f32 %v581_v9, %v1986_v39 }
 0x174   : > { %vm639_vm5 = vcmp.gt.f32.partialorder %v580_v8, 0.0  ;;  %v655_v11 = vmul.f32 0.2, %v580_v8  ;;  %v670_v12 = vsel %vm638_vm4, %v576_v3, %v654_v7 }
 0x175   : > { %703 = vst [vmem:[%s1991_s10 + $0x28] sm:$0xff] %v582_v10  ;;  %686 = vst [vmem:[%s1996_s13 + $0x20] sm:$0xff] %v670_v12 }
 0x176   : > { %v671_v13 = vsel %vm639_vm5, %v580_v8, %v655_v11 }
 0x177   : > { %v585_v14 = vpop.f32.mrb[12].mxu0  ;;  %687 = vst [vmem:[%s1996_s13 + $0x28] sm:$0xff] %v671_v13  ;;  %v716_v15 = vpack.c.bf16 %v671_v13, %v670_v12 }
 0x178   : > { %v586_v16 = vadd.f32 %v585_v14, %v1983_v38  ;;  %v587_v17 = vpop.f32.mrb[13].mxu0 }
 0x179   : > { %v588_v18 = vadd.f32 %v587_v17, %v1986_v39  ;;  %v589_v19 = vpop.f32.mrb[14].mxu0  ;;  %1357 = vmatprep.mubr.bf16.mxu1 %v716_v15 }
 0x17a   : > { %vm640_vm6 = vcmp.gt.f32.partialorder %v586_v16, 0.0  ;;  %v656_v20 = vmul.f32 0.2, %v586_v16  ;;  %v590_v21 = vadd.f32 %v589_v19, %v1983_v38  ;;  %v591_v22 = vpop.f32.mrb[15].mxu0 }
 0x17b   : > { %704 = vst [vmem:[%s1991_s10 + $0x30] sm:$0xff] %v588_v18  ;;  %v592_v23 = vadd.f32 %v591_v22, %v1986_v39 }
 0x17c   : > { %vm641_vm7 = vcmp.gt.f32.partialorder %v590_v21, 0.0  ;;  %v657_v24 = vmul.f32 0.2, %v590_v21  ;;  %v672_v25 = vsel %vm640_vm6, %v586_v16, %v656_v20 }
 0x17d   : > { %705 = vst [vmem:[%s1991_s10 + $0x38] sm:$0xff] %v592_v23  ;;  %688 = vst [vmem:[%s1996_s13 + $0x30] sm:$0xff] %v672_v25 }
 0x17e   : > { %v673_v26 = vsel %vm641_vm7, %v590_v21, %v657_v24 }
 0x17f   : > { %v595_v27 = vpop.f32.mrb[16].mxu0  ;;  %689 = vst [vmem:[%s1996_s13 + $0x38] sm:$0xff] %v673_v26  ;;  %v717_v28 = vpack.c.bf16 %v673_v26, %v672_v25 }
 0x180   : > { %v596_v29 = vadd.f32 %v595_v27, %v1983_v38  ;;  %v597_v30 = vpop.f32.mrb[17].mxu0 }
 0x181   : > { %v598_v31 = vadd.f32 %v597_v30, %v1986_v39  ;;  %v599_v32 = vpop.f32.mrb[18].mxu0  ;;  %1358 = vmatmul.mubr.bf16.gmra.mrb[4].mxu1 %v717_v28 }
 0x182   : > { %vm642_vm8 = vcmp.gt.f32.partialorder %v596_v29, 0.0  ;;  %v658_v33 = vmul.f32 0.2, %v596_v29  ;;  %v600_v34 = vadd.f32 %v599_v32, %v1983_v38  ;;  %v601_v35 = vpop.f32.mrb[19].mxu0 }
 0x183   : > { %706 = vst [vmem:[%s1991_s10 + $0x40] sm:$0xff] %v598_v31  ;;  %v602_v36 = vadd.f32 %v601_v35, %v1986_v39 }
 0x184   : > { %vm643_vm9 = vcmp.gt.f32.partialorder %v600_v34, 0.0  ;;  %v659_v37 = vmul.f32 0.2, %v600_v34  ;;  %v674_v40 = vsel %vm642_vm8, %v596_v29, %v658_v33 }
 0x185   : > { %707 = vst [vmem:[%s1991_s10 + $0x48] sm:$0xff] %v602_v36  ;;  %690 = vst [vmem:[%s1996_s13 + $0x40] sm:$0xff] %v674_v40 }
 0x186   : > { %v675_v41 = vsel %vm643_vm9, %v600_v34, %v659_v37 }
 0x187   : > { %v605_v42 = vpop.f32.mrb[20].mxu0  ;;  %691 = vst [vmem:[%s1996_s13 + $0x48] sm:$0xff] %v675_v41  ;;  %v718_v43 = vpack.c.bf16 %v675_v41, %v674_v40 }
 0x188   : > { %v606_v44 = vadd.f32 %v605_v42, %v1983_v38  ;;  %v607_v45 = vpop.f32.mrb[21].mxu0 }
 0x189   : > { %v608_v46 = vadd.f32 %v607_v45, %v1986_v39  ;;  %v609_v47 = vpop.f32.mrb[22].mxu0  ;;  %1361 = vmatprep.mubr.bf16.mxu1 %v718_v43 }
 0x18a   : > { %vm644_vm10 = vcmp.gt.f32.partialorder %v606_v44, 0.0  ;;  %v660_v48 = vmul.f32 0.2, %v606_v44  ;;  %v610_v49 = vadd.f32 %v609_v47, %v1983_v38  ;;  %v611_v50 = vpop.f32.mrb[23].mxu0 }
 0x18b   : > { %708 = vst [vmem:[%s1991_s10 + $0x50] sm:$0xff] %v608_v46  ;;  %v612_v51 = vadd.f32 %v611_v50, %v1986_v39 }
 0x18c   : > { %vm645_vm11 = vcmp.gt.f32.partialorder %v610_v49, 0.0  ;;  %v661_v52 = vmul.f32 0.2, %v610_v49  ;;  %v676_v53 = vsel %vm644_vm10, %v606_v44, %v660_v48 }
 0x18d   : > { %709 = vst [vmem:[%s1991_s10 + $0x58] sm:$0xff] %v612_v51  ;;  %692 = vst [vmem:[%s1996_s13 + $0x50] sm:$0xff] %v676_v53 }
 0x18e   : > { %v677_v54 = vsel %vm645_vm11, %v610_v49, %v661_v52 }
 0x18f   : > { %v615_v55 = vpop.f32.mrb[24].mxu0  ;;  %693 = vst [vmem:[%s1996_s13 + $0x58] sm:$0xff] %v677_v54  ;;  %v719_v56 = vpack.c.bf16 %v677_v54, %v676_v53 }
 0x190   : > { %v616_v57 = vadd.f32 %v615_v55, %v1983_v38  ;;  %v617_v58 = vpop.f32.mrb[25].mxu0 }
 0x191   : > { %v618_v59 = vadd.f32 %v617_v58, %v1986_v39  ;;  %v619_v60 = vpop.f32.mrb[26].mxu0  ;;  %1362 = vmatmul.mubr.bf16.gmra.mrb[8].mxu1 %v719_v56 }
 0x192   : > { %vm646_vm12 = vcmp.gt.f32.partialorder %v616_v57, 0.0  ;;  %v662_v61 = vmul.f32 0.2, %v616_v57  ;;  %v620_v62 = vadd.f32 %v619_v60, %v1983_v38  ;;  %v621_v63 = vpop.f32.mrb[27].mxu0 }
 0x193   : > { %710 = vst [vmem:[%s1991_s10 + $0x60] sm:$0xff] %v618_v59  ;;  %v622_v0 = vadd.f32 %v621_v63, %v1986_v39 }
 0x194   : > { %vm647_vm13 = vcmp.gt.f32.partialorder %v620_v62, 0.0  ;;  %v663_v1 = vmul.f32 0.2, %v620_v62  ;;  %v678_v2 = vsel %vm646_vm12, %v616_v57, %v662_v61 }
 0x195   : > { %711 = vst [vmem:[%s1991_s10 + $0x68] sm:$0xff] %v622_v0  ;;  %694 = vst [vmem:[%s1996_s13 + $0x60] sm:$0xff] %v678_v2 }
 0x196   : > { %v679_v3 = vsel %vm647_vm13, %v620_v62, %v663_v1 }
 0x197   : > { %v625_v4 = vpop.f32.mrb[28].mxu0  ;;  %695 = vst [vmem:[%s1996_s13 + $0x68] sm:$0xff] %v679_v3  ;;  %v720_v5 = vpack.c.bf16 %v679_v3, %v678_v2 }
 0x198   : > { %v626_v6 = vadd.f32 %v625_v4, %v1983_v38  ;;  %v627_v7 = vpop.f32.mrb[29].mxu0 }
 0x199   : > { %v628_v8 = vadd.f32 %v627_v7, %v1986_v39  ;;  %v629_v9 = vpop.f32.mrb[30].mxu0  ;;  %1365 = vmatprep.mubr.bf16.mxu1 %v720_v5 }
 0x19a   : > { %vm648_vm14 = vcmp.gt.f32.partialorder %v626_v6, 0.0  ;;  %v664_v10 = vmul.f32 0.2, %v626_v6  ;;  %v630_v11 = vadd.f32 %v629_v9, %v1983_v38  ;;  %v631_v12 = vpop.f32.mrb[31].mxu0 }
 0x19b   : > { %712 = vst [vmem:[%s1991_s10 + $0x70] sm:$0xff] %v628_v8  ;;  %v632_v13 = vadd.f32 %v631_v12, %v1986_v39 }
 0x19c   : > { %vm649_vm15 = vcmp.gt.f32.partialorder %v630_v11, 0.0  ;;  %v665_v14 = vmul.f32 0.2, %v630_v11  ;;  %v680_v15 = vsel %vm648_vm14, %v626_v6, %v664_v10 }
 0x19d   : > { %713 = vst [vmem:[%s1991_s10 + $0x78] sm:$0xff] %v632_v13  ;;  %696 = vst [vmem:[%s1996_s13 + $0x70] sm:$0xff] %v680_v15 }
 0x19e   : > { %v681_v16 = vsel %vm649_vm15, %v630_v11, %v665_v14 }
 0x19f   : > { %697 = vst [vmem:[%s1996_s13 + $0x78] sm:$0xff] %v681_v16  ;;  %v721_v17 = vpack.c.bf16 %v681_v16, %v680_v15 }
 0x1a1   : > { %1366 = vmatmul.mubr.bf16.gmra.mrb[12].mxu1 %v721_v17 }
 0x1a2   : > { %1594 = shalt.err (!%p1591_p2)
}
 0x1a3   : > { %s1595_s13 = scalar_lea.hbm %s2062_s11, 2048  ;;  %s1599_s29 = scalar_lea.hbm %s2203_s5, 4096 }
 0x1a4   : > { %p1596_p13 = scmp.ne.s32.totalorder %s2062_s11, %s1595_s13  ;;  %p1600_p4 = scmp.lt.u32.totalorder %s2062_s11, %s2203_s5 }
 0x1a5   : > { %p1601_p7 = scmp.lt.u32.totalorder %s1599_s29, %s1595_s13  ;;  %p1603_p11 = scmp.lt.u32.totalorder %s1595_s13, %s2062_s11 }
 0x1a6   : > { %p1597_p6 = pnand %p1596_p13, %p2225_p0 }
 0x1a7   : > { %p1602_p8 = por %p1601_p7, %p1600_p4 }
 0x1a8   : > { %p1598_p10 = pneg %p1597_p6 }
 0x1a9   : > { %p1604_p1 = por %p1603_p11, %p1602_p8 }
 0x1ab   : > { %p1605_p3 = pnand %p1604_p1, %p1598_p10 }
 0x1ad   : > { %1608 = shalt.err (!%p1605_p3)
}
 0x1ae   : > { %s2212_s18 = smov 128   ;;  %s2213_s9 = smov 8   ;;  %v1218_v39 = vld [vmem:[%s2202_s4] ss:$0 sm:$0xff] }
 0x1af   : > { %1379 = dma.vmem_to_hbm [thread:$0]  (%p2225_p0), %s2065_s23, 2048, %s2062_s11, %s971_s20, %s2212_s18, %s2212_s18, %s2213_s9  }
 0x1b0   : > { %s2099_s13 = scalar_lea.vmem [#allocation9], %s1188_s15  ;;  %s975_s15 = sand.u32 1, %s1789_s28  }
 0x1b1   : > { %s1010_s22 = sshll.u32 %s2099_s13, 4  ;;  %s1272_s11 = sshll.u32 %s1789_s28, 10  ;;  %s2110_s22 = int_to_ptr.vmem [resolvable:$true] %s1010_s22 }
 0x1b2   : > { %s1026_s23 = sshll.u32 %s1991_s10, 4  ;;  %s2116_s29 = scalar_lea.hbm %s2204_s6, %s1272_s11  ;;  %s2126_s23 = int_to_ptr.vmem [resolvable:$true] %s1026_s23 }
 0x1b3   : > { %s2226_s30 = sshll.u32 %s1789_s28, 11  ;;  %s2129_s9 = scalar_lea.sflag [#allocation10], %s975_s15 }
 0x1b4   : > { %s2124_s18 = scalar_lea.hbm %s2205_s7, %s2226_s30  ;;  %s1609_s10 = scalar_lea.vmem %s2110_s22, 1024 }
 0x1b5   : > { %p1610_p5 = scmp.ne.s32.totalorder %s2110_s22, %s1609_s10  ;;  %s1724_s11 = smov [#allocation9]  }
 0x1b6   : > { %s1613_s20 = sshll.u32 %s1724_s11, 4  ;;  %s1614_s20 = int_to_ptr.vmem [resolvable:$false] %s1613_s20 }
 0x1b7   : > { %p1611_p9 = pnand %p1610_p5, %p2225_p0  ;;  %s1615_s14 = scalar_lea.vmem %s1614_s20, 2048 }
 0x1b8   : > { %p1616_p2 = scmp.lt.s32.totalorder %s2110_s22, %s1614_s20  ;;  %p1617_p13 = scmp.lt.s32.totalorder %s1615_s14, %s1609_s10 }
 0x1b9   : > { %p1612_p12 = pneg %p1611_p9 }
 0x1ba   : > { %p1618_p6 = por %p1617_p13, %p1616_p2 }
 0x1bc   : > { %p1619_p10 = pnand %p1618_p6, %p1612_p12 }
 0x244   : > { %v1355_v38 = vpop.f32.mrb[0].mxu1 }
 0x245   : > { %v827_v18 = vpop.f32.mrb[1].mxu1  ;;  %v836_v20 = vadd.f32 %v1355_v38, %v1218_v39 }
 0x246   : > { %v1356_v19 = vpop.f32.mrb[2].mxu1  ;;  %v828_v23 = vadd.f32 %v1218_v39, %v827_v18 }
 0x247   : > { %v839_v21 = vadd.f32 %v1356_v19, %v1218_v39  ;;  %v830_v22 = vpop.f32.mrb[3].mxu1 }
 0x248   : > { %v831_v24 = vadd.f32 %v1218_v39, %v830_v22 }
 0x249   : > { %v1282_v25 = vpack.c.bf16 %v839_v21, %v836_v20 }
 0x24a   : > { %v1277_v26 = vpack.c.bf16 %v831_v24, %v828_v23 }
 0x24b   : > { %1314 = vst [vmem:[%s2099_s13 + $0x8] sm:$0xff] %v1282_v25  }
 0x24c   : > { %1278 = vst [vmem:[%s2099_s13] sm:$0xff] %v1277_v26  }
 0x254   : > { %v1359_v27 = vpop.f32.mrb[4].mxu1 }
 0x255   : > { %v843_v28 = vpop.f32.mrb[5].mxu1  ;;  %v852_v30 = vadd.f32 %v1359_v27, %v1218_v39 }
 0x256   : > { %v1360_v29 = vpop.f32.mrb[6].mxu1  ;;  %v844_v33 = vadd.f32 %v1218_v39, %v843_v28 }
 0x257   : > { %v855_v31 = vadd.f32 %v1360_v29, %v1218_v39  ;;  %v846_v32 = vpop.f32.mrb[7].mxu1 }
 0x258   : > { %v847_v34 = vadd.f32 %v1218_v39, %v846_v32 }
 0x259   : > { %v1292_v35 = vpack.c.bf16 %v855_v31, %v852_v30 }
 0x25a   : > { %v1287_v36 = vpack.c.bf16 %v847_v34, %v844_v33 }
 0x25b   : > { %1316 = vst [vmem:[%s2099_s13 + $0x18] sm:$0xff] %v1292_v35  }
 0x25c   : > { %1315 = vst [vmem:[%s2099_s13 + $0x10] sm:$0xff] %v1287_v36  }
 0x264   : > { %v1363_v37 = vpop.f32.mrb[8].mxu1 }
 0x265   : > { %v859_v40 = vpop.f32.mrb[9].mxu1  ;;  %v868_v42 = vadd.f32 %v1363_v37, %v1218_v39 }
 0x266   : > { %v1364_v41 = vpop.f32.mrb[10].mxu1  ;;  %v860_v45 = vadd.f32 %v1218_v39, %v859_v40 }
 0x267   : > { %v871_v43 = vadd.f32 %v1364_v41, %v1218_v39  ;;  %v862_v44 = vpop.f32.mrb[11].mxu1 }
 0x268   : > { %v863_v46 = vadd.f32 %v1218_v39, %v862_v44 }
 0x269   : > { %v1302_v47 = vpack.c.bf16 %v871_v43, %v868_v42 }
 0x26a   : > { %v1297_v48 = vpack.c.bf16 %v863_v46, %v860_v45 }
 0x26b   : > { %1318 = vst [vmem:[%s2099_s13 + $0x28] sm:$0xff] %v1302_v47  }
 0x26c   : > { %1317 = vst [vmem:[%s2099_s13 + $0x20] sm:$0xff] %v1297_v48  }
 0x274   : > { %v1367_v49 = vpop.f32.mrb[12].mxu1 }
 0x275   : > { %v875_v50 = vpop.f32.mrb[13].mxu1  ;;  %v884_v52 = vadd.f32 %v1367_v49, %v1218_v39 }
 0x276   : > { %v1368_v51 = vpop.f32.mrb[14].mxu1  ;;  %v876_v55 = vadd.f32 %v1218_v39, %v875_v50 }
 0x277   : > { %v887_v53 = vadd.f32 %v1368_v51, %v1218_v39  ;;  %v878_v54 = vpop.f32.mrb[15].mxu1 }
 0x278   : > { %v879_v56 = vadd.f32 %v1218_v39, %v878_v54 }
 0x279   : > { %v1312_v57 = vpack.c.bf16 %v887_v53, %v884_v52 }
 0x27a   : > { %v1307_v58 = vpack.c.bf16 %v879_v56, %v876_v55 }
 0x27b   : > { %1320 = vst [vmem:[%s2099_s13 + $0x38] sm:$0xff] %v1312_v57  }
 0x27c   : > { %1319 = vst [vmem:[%s2099_s13 + $0x30] sm:$0xff] %v1307_v58  }
 0x27d   : > { %1622 = shalt.err (!%p1619_p10)
}
 0x27e   : > { %s1623_s28 = scalar_lea.hbm %s2116_s29, 1024  ;;  %s1627_s30 = scalar_lea.hbm %s2204_s6, 2048 }
 0x27f   : > { %p1624_p4 = scmp.ne.s32.totalorder %s2116_s29, %s1623_s28  ;;  %p1628_p11 = scmp.lt.u32.totalorder %s2116_s29, %s2204_s6 }
 0x280   : > { %p1629_p1 = scmp.lt.u32.totalorder %s1627_s30, %s1623_s28  ;;  %p1631_p5 = scmp.lt.u32.totalorder %s1623_s28, %s2116_s29 }
 0x281   : > { %p1625_p7 = pnand %p1624_p4, %p2225_p0 }
 0x282   : > { %p1630_p3 = por %p1629_p1, %p1628_p11 }
 0x283   : > { %p1626_p8 = pneg %p1625_p7 }
 0x284   : > { %p1632_p9 = por %p1631_p5, %p1630_p3 }
 0x286   : > { %p1633_p12 = pnand %p1632_p9, %p1626_p8 }
 0x288   : > { %1636 = shalt.err (!%p1633_p12)
}
 0x289   : > { %s1725_s10 = smov 64   ;;  %s1726_s11 = smov 4  }
 0x28a   : > { %1380 = dma.vmem_to_hbm [thread:$0]  (%p2225_p0), %s2110_s22, 1024, %s2116_s29, %s2129_s9, %s1725_s10, %s1725_s10, %s1726_s11  }
 0x28b   : > { %s1637_s20 = scalar_lea.vmem %s2126_s23, 2048  ;;  %s1727_s14 = smov [#allocation11]  }
 0x28c   : > { %p1638_p2 = scmp.ne.s32.totalorder %s2126_s23, %s1637_s20  ;;  %s1641_s28 = sshll.u32 %s1727_s14, 4  ;;  %s1642_s28 = int_to_ptr.vmem [resolvable:$false] %s1641_s28 }
 0x28d   : > { %s1643_s13 = scalar_lea.vmem %s1642_s28, 4096  ;;  %p1644_p10 = scmp.lt.s32.totalorder %s2126_s23, %s1642_s28 }
 0x28e   : > { %p1639_p13 = pnand %p1638_p2, %p2225_p0  ;;  %p1645_p4 = scmp.lt.s32.totalorder %s1643_s13, %s1637_s20 }
 0x290   : > { %p1640_p6 = pneg %p1639_p13  ;;  %p1646_p7 = por %p1645_p4, %p1644_p10 }
 0x292   : > { %p1647_p8 = pnand %p1646_p7, %p1640_p6 }
 0x294   : > { %1650 = shalt.err (!%p1647_p8)
}
 0x295   : > { %s1651_s22 = scalar_lea.hbm %s2124_s18, 2048  ;;  %s1655_s30 = scalar_lea.hbm %s2205_s7, 4096 }
 0x296   : > { %p1652_p11 = scmp.ne.s32.totalorder %s2124_s18, %s1651_s22  ;;  %p1656_p5 = scmp.lt.u32.totalorder %s2124_s18, %s2205_s7 }
 0x297   : > { %p1657_p9 = scmp.lt.u32.totalorder %s1655_s30, %s1651_s22  ;;  %p1659_p2 = scmp.lt.u32.totalorder %s1651_s22, %s2124_s18 }
 0x298   : > { %p1653_p1 = pnand %p1652_p11, %p2225_p0 }
 0x299   : > { %p1658_p12 = por %p1657_p9, %p1656_p5 }
 0x29a   : > { %p1654_p3 = pneg %p1653_p1 }
 0x29b   : > { %p1660_p13 = por %p1659_p2, %p1658_p12 }
 0x29d   : > { %p1661_p6 = pnand %p1660_p13, %p1654_p3 }
 0x29f   : > { %1664 = shalt.err (!%p1661_p6)
}
 0x2a0   : > { %s2227_s10 = smov 8   ;;  %s2228_s11 = smov 128  }
 0x2a1   : > { %1381 = dma.vmem_to_hbm [thread:$0]  (%p2225_p0), %s2126_s23, 2048, %s2124_s18, %s2129_s9, %s2228_s11, %s2228_s11, %s2227_s10  }
 0x2a2 PF: > { %s1041_s20 = sand.u32 1, %s1699_s24   ;;  %p2229_p10 = scmp.ne.s32.totalorder %s2215_s8, 0 }
 0x2a3   : > { %p2230_p4 = scmp.ge.s32.totalorder %s1711_s27, 2  ;;  %s1042_s14 = scalar_lea.sflag [#allocation4], %s1041_s20 }
 0x2a5   : > { %p1397_p7 = pnand %p2230_p4, %p2229_p10 }
 0x2a7   : > { %1690 = dma.done.wait (!%p1397_p7), %s1042_s14, 2048  }
 0x2a8   : > { %1692 = vsyncadd (!%p1397_p7), %s1042_s14, 4294965248  ;;  %s2231_s12 = sadd.s32 4294967294, %s1711_s27  }
 0x2a9   : > { %s1050_s28 = sand.u32 1, %s2231_s12  }
 0x2aa   : > { %s1051_s13 = scalar_lea.sflag [#allocation10], %s1050_s28 }
 0x2ab   : > { %1694 = dma.done.wait (!%p1397_p7), %s1051_s13, 3072  }
 0x2ac   : > { %1696 = vsyncadd (!%p1397_p7), %s1051_s13, 4294964224  ;;  %p25_p0 = scmp.ge.s32.totalorder %s1883_s16, 4   ;;  %s2232_s24 = smov %s1703_s25 }
 0x2ad   : > { %s2233_s25 = smov %s1707_s26  ;;  %s2234_s26 = smov %s1892_s19 }
 0x2ae   : > { %s2235_s27 = smov %s1883_s16  ;;  %27 = sbr.rel (!%p25_p0) target bundleno = 8 (0x8), region = 125 }
 0x2b5   :  { %1065 = vsyncpa [#allocation3], 1 }
 0x2b6   :  { %1067 = vsyncpa [#allocation3 + $0x1], 1 }
 0x2b7   :  { %1068 = vsyncpa [#allocation6], 1 }
 0x2b8   :  { %1069 = vsyncpa [#allocation4], 1 }
 0x2b9   :  { %1071 = vsyncpa [#allocation4 + $0x1], 1 }
 0x2ba   :  { %1072 = vsyncpa [#allocation10], 1 }
 0x2bb   :  { %1074 = vsyncpa [#allocation10 + $0x1], 1 }

</bundles_post_ra>
